<compile_context>
chip_gen: v7x
topology: tpu7x:2x2x1
jax: 0.10.0
libtpu: 0.0.40
codegen_flags: <defaults>
</compile_context>

<pallas_src>
import functools

import jax
import jax.numpy as jnp
import numpy as np
from jax import lax
from jax.experimental import pallas as pl
from jax.experimental.pallas import tpu as pltpu


def _round_up(n, m):
    return ((n + m - 1) // m) * m


def portfolio_kernel(x_ref, w1_ref, b1_ref, w2_ref, b2_ref, out_ref,
                     *, compute_dtype):
    tb, a, f = x_ref.shape          # batch tile, assets, features (static)
    a_pad = out_ref.shape[-1]       # lane-dense output width (multiple of 128)
    m_rows = tb * a

    # (tb, a, f) -> (tb*a, f): merge leading dims (minor dim preserved -> cheap
    # retile); cast to the MXU dtype in-kernel (hidden under the input DMA).
    x = x_ref[...].reshape(m_rows, f).astype(compute_dtype)

    # ScoreBlock Linear 1 on the MXU: one large-M matmul, f32 accumulation.
    # (For very large H on v7x's 64 MiB VMEM, chunk the H axis here and fold the
    #  second linear's partial sums into the loop instead of materializing h.)
    h = jnp.dot(x, w1_ref[...].astype(compute_dtype),
                preferred_element_type=jnp.float32)               # (M, H) f32
    h = jnp.maximum(h + b1_ref[...], 0.0)                         # bias + ReLU (VPU)

    # ScoreBlock Linear 2 (out_features=1): VPU multiply + lane reduction
    # instead of a degenerate (H, 1) MXU matmul.
    s_col = jnp.sum(h * w2_ref[...], axis=-1, keepdims=True) + b2_ref[...]   # (M, 1)

    # Relayout scores (M, 1) -> (tb, a) with assets on lanes, using only
    # broadcast / iota / where / leading-dim reshape / sublane reduce (avoids a
    # narrow sublane->lane shape_cast). Scratch is O(tb * a^2) f32 -- fine for
    # portfolio-sized asset counts; revisit for A >= ~256.
    col = lax.broadcasted_iota(jnp.int32, (m_rows, a), 1)
    row = lax.broadcasted_iota(jnp.int32, (m_rows, a), 0)
    scattered = jnp.where(row % a == col, s_col, 0.0)             # (M, a)
    s = jnp.sum(scattered.reshape(tb, a, a), axis=1)              # (tb, a)

    # PortfolioBlock: softmax over the asset (lane) axis; exact normalization
    # (exact divide, not approx reciprocal) so weights sum to 1 tightly.
    s_max = jnp.max(s, axis=-1, keepdims=True)
    p = jnp.exp(s - s_max)
    weights = p / jnp.sum(p, axis=-1, keepdims=True)

    # Lane-dense (tb, a_pad) output slab; padded asset lanes get exact zeros.
    if a == a_pad:
        out_ref[...] = weights.astype(out_ref.dtype)
    else:
        out_ref[...] = jnp.zeros((tb, a_pad), out_ref.dtype)
        out_ref[:, :a] = weights.astype(out_ref.dtype)


def portfolio_model(x, w1, b1, w2, b2, *, block_b=None,
                    compute_dtype=jnp.bfloat16):
    """Forward pass of PortfolioModel. x: (B, A, F) -> weights (B, A)."""
    B, A, F = x.shape
    F_w, H = w1.shape
    assert F_w == F, (F_w, F)

    # Only the *output* slab is lane-padded (tiny); x is fed at its natural
    # (B, A, F) size -- no 128-wide asset padding of the matmul input / DMA.
    A_pad = _round_up(A, 128)

    if block_b is None:
        # Target ~1 MiB of x per grid step (measured ~85% of the HBM roofline at
        # MiB-scale tiles vs ~29% at 128-row tiles); the demo shapes collapse to
        # a single grid step. For realistic shapes also keep B_pad // block_b
        # even so both v7x TensorCores get work.
        rows = (1 << 20) // max(1, A * F * x.dtype.itemsize)
        block_b = max(1, min(B, rows))
    TB = block_b
    B_pad = _round_up(B, TB)

    # Pad batch only when B % TB != 0 (padded rows are sliced off below).
    if B_pad != B:
        x = jnp.pad(x, ((0, B_pad - B), (0, 0), (0, 0)))

    b1_2d = b1.reshape(1, H).astype(jnp.float32)
    w2_row = w2.reshape(1, H).astype(jnp.float32)     # (H, 1) -> (1, H) row
    b2_2d = b2.reshape(1, 1).astype(jnp.float32)

    kernel = functools.partial(portfolio_kernel, compute_dtype=compute_dtype)

    out = pl.pallas_call(
        kernel,
        out_shape=jax.ShapeDtypeStruct((B_pad, A_pad), jnp.float32),
        grid_spec=pltpu.PrefetchScalarGridSpec(
            num_scalar_prefetch=0,
            grid=(B_pad // TB,),
            in_specs=[
                pl.BlockSpec((TB, A, F), lambda i: (i, 0, 0)),  # natural x layout
                pl.BlockSpec((F, H), lambda i: (0, 0)),         # W1 (cast in-kernel)
                pl.BlockSpec((1, H), lambda i: (0, 0)),         # b1
                pl.BlockSpec((1, H), lambda i: (0, 0)),         # W2 as a row
                pl.BlockSpec((1, 1), lambda i: (0, 0)),         # b2
            ],
            out_specs=pl.BlockSpec((TB, A_pad), lambda i: (i, 0)),
        ),
        # Default scoped VMEM (16/32 MiB on v5e / v6e+v7x) covers the ~MiB-scale
        # double-buffered tiles chosen above; raise vmem_limit_bytes here if TB
        # is pushed larger on v6e's 128 MiB physical VMEM.
        compiler_params=pltpu.CompilerParams(
            dimension_semantics=("parallel",)),
    )(x, w1.astype(jnp.float32), b1_2d, w2_row, b2_2d)

    return out[:B, :A]


def portfolio_model_ref(x, w1, b1, w2, b2, compute_dtype=jnp.bfloat16):
    # Same math (including the bf16 rounding of the matmul operands) in plain JAX.
    xc = x.astype(compute_dtype).astype(jnp.float32)
    w1c = w1.astype(compute_dtype).astype(jnp.float32)
    h = jnp.maximum(jnp.einsum("baf,fh->bah", xc, w1c) + b1, 0.0)
    s = jnp.einsum("bah,ho->bao", h, w2)[..., 0] + b2[0]          # (B, A)
    return jax.nn.softmax(s, axis=-1)


if __name__ == "__main__":
    B, A, F, H = 16, 8, 16, 64   # batch, assets, input_dim, hidden_dim (module default)

    key = jax.random.PRNGKey(0)
    kx, k1, k2, k3, k4 = jax.random.split(key, 5)

    x = jax.random.normal(kx, (B, A, F), dtype=jnp.float32)
    # Deterministic parameter init (uniform, scaled like nn.Linear defaults).
    w1 = jax.random.uniform(k1, (F, H), jnp.float32, -1.0, 1.0) / jnp.sqrt(F)
    b1 = jax.random.uniform(k2, (H,), jnp.float32, -1.0, 1.0) / jnp.sqrt(F)
    w2 = jax.random.uniform(k3, (H, 1), jnp.float32, -1.0, 1.0) / jnp.sqrt(H)
    b2 = jax.random.uniform(k4, (1,), jnp.float32, -1.0, 1.0) / jnp.sqrt(H)

    ref = portfolio_model_ref(x, w1, b1, w2, b2)

    # Auto tile size: whole batch in one grid step at these tiny shapes.
    weights = jax.block_until_ready(portfolio_model(x, w1, b1, w2, b2))
    np.testing.assert_allclose(np.asarray(weights), np.asarray(ref),
                               rtol=2e-2, atol=2e-3)
    # Exact softmax normalization -> weights sum to 1 to f32 precision.
    np.testing.assert_allclose(np.asarray(weights).sum(-1), np.ones(B),
                               rtol=0, atol=1e-5)

    # Explicit batch tiling: 2 grid steps of 8 batch rows each.
    weights2 = jax.block_until_ready(
        portfolio_model(x, w1, b1, w2, b2, block_b=8))
    np.testing.assert_allclose(np.asarray(weights2), np.asarray(ref),
                               rtol=2e-2, atol=2e-3)

    print("KERNEL_OK")
</pallas_src>

<mosaic_0001>
module attributes {stable_mosaic.version = 11 : i64} {
  func.func @portfolio_kernel(%arg0: i32, %arg1: memref<16x8x16xf32, #tpu.memory_space<vmem>>, %arg2: memref<16x64xf32, #tpu.memory_space<vmem>>, %arg3: memref<1x64xf32, #tpu.memory_space<vmem>>, %arg4: memref<1x64xf32, #tpu.memory_space<vmem>>, %arg5: memref<1x1xf32, #tpu.memory_space<vmem>>, %arg6: memref<16x128xf32, #tpu.memory_space<vmem>>) attributes {dimension_semantics = [#tpu.dimension_semantics<parallel>], iteration_bounds = array<i64: 1>, scalar_prefetch = 0 : i64, scratch_operands = 0 : i64, tpu.core_type = #tpu.core_type<tc>, window_params = [{transform_indices = @transform_0, window_bounds = array<i64: 16, 8, 16>}, {pipeline_mode = #tpu.pipeline_mode<synchronous>, transform_indices = @transform_1, window_bounds = array<i64: 16, 64>}, {pipeline_mode = #tpu.pipeline_mode<synchronous>, transform_indices = @transform_2, window_bounds = array<i64: 1, 64>}, {pipeline_mode = #tpu.pipeline_mode<synchronous>, transform_indices = @transform_3, window_bounds = array<i64: 1, 64>}, {pipeline_mode = #tpu.pipeline_mode<synchronous>, transform_indices = @transform_4, window_bounds = array<i64: 1, 1>}, {transform_indices = @transform_5, window_bounds = array<i64: 16, 128>}]} {
    %c0 = arith.constant 0 : index
    %c0_0 = arith.constant 0 : index
    %c0_1 = arith.constant 0 : index
    %0 = vector.load %arg1[%c0, %c0_0, %c0_1] : memref<16x8x16xf32, #tpu.memory_space<vmem>>, vector<16x8x16xf32>
    %1 = vector.shape_cast %0 : vector<16x8x16xf32> to vector<128x16xf32>
    %2 = arith.truncf %1 : vector<128x16xf32> to vector<128x16xbf16>
    %c0_2 = arith.constant 0 : index
    %c0_3 = arith.constant 0 : index
    %3 = vector.load %arg2[%c0_2, %c0_3] : memref<16x64xf32, #tpu.memory_space<vmem>>, vector<16x64xf32>
    %4 = arith.truncf %3 : vector<16x64xf32> to vector<16x64xbf16>
    %cst = arith.constant dense<0.000000e+00> : vector<128x64xf32>
    %5 = tpu.matmul %2, %4, %cst {dimension_numbers = #tpu.dot_dimension_numbers<[1], [0], [0], [1], [0, 0, 1, 1], [], []>} : vector<128x16xbf16>, vector<16x64xbf16>, vector<128x64xf32> -> vector<128x64xf32>
    %c0_4 = arith.constant 0 : index
    %c0_5 = arith.constant 0 : index
    %6 = vector.load %arg3[%c0_4, %c0_5] : memref<1x64xf32, #tpu.memory_space<vmem>>, vector<1x64xf32>
    %7 = vector.broadcast %6 : vector<1x64xf32> to vector<128x64xf32>
    %8 = arith.addf %5, %7 : vector<128x64xf32>
    %cst_6 = arith.constant 0.000000e+00 : f32
    %9 = vector.broadcast %cst_6 : f32 to vector<128x64xf32>
    %10 = arith.maximumf %8, %9 : vector<128x64xf32>
    %c0_7 = arith.constant 0 : index
    %c0_8 = arith.constant 0 : index
    %11 = vector.load %arg4[%c0_7, %c0_8] : memref<1x64xf32, #tpu.memory_space<vmem>>, vector<1x64xf32>
    %12 = vector.broadcast %11 : vector<1x64xf32> to vector<128x64xf32>
    %13 = arith.mulf %10, %12 : vector<128x64xf32>
    %cst_9 = arith.constant dense<0.000000e+00> : vector<128xf32>
    %14 = vector.multi_reduction <add>, %13, %cst_9 [1] : vector<128x64xf32> to vector<128xf32>
    %15 = vector.shape_cast %14 : vector<128xf32> to vector<128x1xf32>
    %c0_10 = arith.constant 0 : index
    %c0_11 = arith.constant 0 : index
    %16 = vector.load %arg5[%c0_10, %c0_11] : memref<1x1xf32, #tpu.memory_space<vmem>>, vector<1x1xf32>
    %17 = vector.broadcast %16 : vector<1x1xf32> to vector<128x1xf32>
    %18 = arith.addf %15, %17 : vector<128x1xf32>
    %19 = tpu.iota {dimensions = array<i32: 1>} : vector<128x8xi32>
    %20 = tpu.iota {dimensions = array<i32: 0>} : vector<128x8xi32>
    %c8_i32 = arith.constant 8 : i32
    %c0_i32 = arith.constant 0 : i32
    %21 = arith.cmpi eq, %c8_i32, %c0_i32 : i32
    %c1_i32 = arith.constant 1 : i32
    %22 = arith.select %21, %c1_i32, %c8_i32 : i32
    %23 = vector.broadcast %22 : i32 to vector<128x8xi32>
    %24 = arith.remsi %20, %23 : vector<128x8xi32>
    %c0_i32_12 = arith.constant 0 : i32
    %25 = vector.broadcast %c0_i32_12 : i32 to vector<128x8xi32>
    %26 = arith.cmpi ne, %24, %25 : vector<128x8xi32>
    %c0_i32_13 = arith.constant 0 : i32
    %27 = vector.broadcast %c0_i32_13 : i32 to vector<128x8xi32>
    %28 = arith.cmpi slt, %24, %27 : vector<128x8xi32>
    %c0_i32_14 = arith.constant 0 : i32
    %29 = arith.cmpi slt, %22, %c0_i32_14 : i32
    %30 = vector.broadcast %29 : i1 to vector<128x8xi1>
    %31 = vector.broadcast %30 : vector<128x8xi1> to vector<128x8xi1>
    %32 = arith.xori %28, %31 : vector<128x8xi1>
    %33 = arith.andi %32, %26 : vector<128x8xi1>
    %34 = vector.broadcast %22 : i32 to vector<128x8xi32>
    %35 = arith.addi %24, %34 : vector<128x8xi32>
    %36 = arith.select %33, %35, %24 : vector<128x8xi1>, vector<128x8xi32>
    %37 = arith.cmpi eq, %36, %19 : vector<128x8xi32>
    %cst_15 = arith.constant 0.000000e+00 : f32
    %38 = vector.shape_cast %18 : vector<128x1xf32> to vector<128x1xf32>
    %39 = vector.broadcast %38 : vector<128x1xf32> to vector<128x8xf32>
    %40 = vector.broadcast %cst_15 : f32 to vector<128x8xf32>
    %41 = arith.select %37, %39, %40 : vector<128x8xi1>, vector<128x8xf32>
    %42 = vector.shape_cast %41 : vector<128x8xf32> to vector<16x8x8xf32>
    %cst_16 = arith.constant dense<0.000000e+00> : vector<16x8xf32>
    %43 = vector.multi_reduction <add>, %42, %cst_16 [1] : vector<16x8x8xf32> to vector<16x8xf32>
    %cst_17 = arith.constant dense<0xFF800000> : vector<16xf32>
    %44 = vector.multi_reduction <maximumf>, %43, %cst_17 [1] : vector<16x8xf32> to vector<16xf32>
    %45 = vector.shape_cast %44 : vector<16xf32> to vector<16x1xf32>
    %46 = vector.broadcast %45 : vector<16x1xf32> to vector<16x8xf32>
    %47 = arith.subf %43, %46 : vector<16x8xf32>
    %48 = math.exp %47 : vector<16x8xf32>
    %cst_18 = arith.constant dense<0.000000e+00> : vector<16xf32>
    %49 = vector.multi_reduction <add>, %48, %cst_18 [1] : vector<16x8xf32> to vector<16xf32>
    %50 = vector.shape_cast %49 : vector<16xf32> to vector<16x1xf32>
    %51 = vector.broadcast %50 : vector<16x1xf32> to vector<16x8xf32>
    %52 = arith.divf %48, %51 : vector<16x8xf32>
    %cst_19 = arith.constant 0.000000e+00 : f32
    %53 = vector.broadcast %cst_19 : f32 to vector<16x128xf32>
    %c0_20 = arith.constant 0 : index
    %c0_21 = arith.constant 0 : index
    %54 = vector.load %arg6[%c0_20, %c0_21] : memref<16x128xf32, #tpu.memory_space<vmem>>, vector<16x128xf32>
    tpu.vector_store %arg6[%c0_20, %c0_21], %53 {strides = array<i32>} : memref<16x128xf32, #tpu.memory_space<vmem>>, vector<16x128xf32>,
    %c0_22 = arith.constant 0 : index
    %c0_23 = arith.constant 0 : index
    %55 = vector.load %arg6[%c0_22, %c0_23] : memref<16x128xf32, #tpu.memory_space<vmem>>, vector<16x8xf32>
    tpu.vector_store %arg6[%c0_22, %c0_23], %52 {strides = array<i32>} : memref<16x128xf32, #tpu.memory_space<vmem>>, vector<16x8xf32>,
    return
  }
  func.func @transform_0(%arg0: i32) -> (i32, i32, i32) {
    %c0_i32 = arith.constant 0 : i32
    %c0_i32_0 = arith.constant 0 : i32
    %c0_i32_1 = arith.constant 0 : i32
    return %arg0, %c0_i32, %c0_i32_0 : i32, i32, i32
  }
  func.func @transform_1(%arg0: i32) -> (i32, i32) {
    %c0_i32 = arith.constant 0 : i32
    %c0_i32_0 = arith.constant 0 : i32
    %c0_i32_1 = arith.constant 0 : i32
    return %c0_i32, %c0_i32_0 : i32, i32
  }
  func.func @transform_2(%arg0: i32) -> (i32, i32) {
    %c0_i32 = arith.constant 0 : i32
    %c0_i32_0 = arith.constant 0 : i32
    %c0_i32_1 = arith.constant 0 : i32
    return %c0_i32, %c0_i32_0 : i32, i32
  }
  func.func @transform_3(%arg0: i32) -> (i32, i32) {
    %c0_i32 = arith.constant 0 : i32
    %c0_i32_0 = arith.constant 0 : i32
    %c0_i32_1 = arith.constant 0 : i32
    return %c0_i32, %c0_i32_0 : i32, i32
  }
  func.func @transform_4(%arg0: i32) -> (i32, i32) {
    %c0_i32 = arith.constant 0 : i32
    %c0_i32_0 = arith.constant 0 : i32
    %c0_i32_1 = arith.constant 0 : i32
    return %c0_i32, %c0_i32_0 : i32, i32
  }
  func.func @transform_5(%arg0: i32) -> (i32, i32) {
    %c0_i32 = arith.constant 0 : i32
    %c0_i32_0 = arith.constant 0 : i32
    return %arg0, %c0_i32 : i32, i32
  }
}

</mosaic_0001>

<bundles_post_ra>
// kernel: tpu_custom_call.1
= control target key start
LH: loop header
LB: loop body
LE: loop exit
PB: predicated region body
PF: predicated region fallthrough
CT: control target
= control target key end

     0   :  { %s1700_s0 = inlined_call_operand.hbm [shape: f32[16,8,16], index: 0, kind: input, shape index: {}]   ;;  %s1701_s1 = inlined_call_operand.hbm [shape: f32[16,64], index: 1, kind: input, shape index: {}]   ;;  %s1702_s2 = inlined_call_operand.vmem [shape: f32[1,64], index: 2, kind: input, shape index: {}]   ;;  %s1703_s3 = inlined_call_operand.vmem [shape: f32[1,64], index: 3, kind: input, shape index: {}]   ;;  %s1704_s4 = inlined_call_operand.<no memory space> [shape: f32[1,1], index: 4, kind: input, shape index: {}]   ;;  %s1705_s5 = inlined_call_operand.hbm [shape: f32[16,128], index: 5, kind: output, shape index: {}]  }
   0x1   :  { %v10_v0 = vstv %s1704_s4 }
   0x2   :  { %11 = vst [vmem:[#allocation2] sm:$0x1] %v10_v0 }
   0x3   :  { %12 = vsyncpa [#allocation4], 0 }
   0x4   :  { %13 = vsyncpa [#allocation7], 0 }
   0x5   :  { %14 = vsyncpa [#allocation5], 0  ;;  %s1249_s20 = smov [#allocation3]   ;;  %s1177_s24 = scalar_lea.hbm %s1700_s0, 2048 }
   0x6   :  { %s20_s21 = sshll.u32 %s1249_s20, 4  ;;  %p1178_p0 = scmp.ne.s32.totalorder %s1700_s0, %s1177_s24  ;;  %s21_s21 = int_to_ptr.vmem [resolvable:$true] %s20_s21 }
   0x7   :  { %p1181_p1 = scmp.lt.u32.totalorder %s1177_s24, %s1700_s0 }
   0x9   :  { %p1183_p2 = pnand %p1181_p1, %p1178_p0 }
   0xb   :  { %1186 = shalt.err (!%p1183_p2)
}
   0xc   :  { %s1187_s4 = scalar_lea.vmem %s21_s21, 2048  ;;  %p1192_p4 = scmp.lt.s32.totalorder %s21_s21, %s21_s21 }
   0xd   :  { %p1188_p3 = scmp.ne.s32.totalorder %s21_s21, %s1187_s4  ;;  %p1193_p5 = scmp.lt.s32.totalorder %s1187_s4, %s1187_s4 }
   0xf   :  { %p1194_p6 = por %p1193_p5, %p1192_p4 }
  0x11   :  { %p1195_p7 = pnand %p1194_p6, %p1188_p3 }
  0x13   :  { %1198 = shalt.err (!%p1195_p7)
}
  0x14   :  { %s1250_s29 = smov 128   ;;  %s1251_s30 = smov 8  }
  0x15   :  { %26 = dma.hbm_to_vmem [thread:$0]  %s1700_s0, 2048, %s21_s21, [#allocation4], %s1250_s29, %s1250_s29, %s1251_s30  }
  0x16   :  { %s1252_s8 = smov [#allocation6]   ;;  %s1199_s12 = scalar_lea.hbm %s1701_s1, 256 }
  0x17   :  { %s32_s9 = sshll.u32 %s1252_s8, 4  ;;  %p1200_p8 = scmp.ne.s32.totalorder %s1701_s1, %s1199_s12  ;;  %s33_s9 = int_to_ptr.vmem [resolvable:$true] %s32_s9 }
  0x18   :  { %p1203_p9 = scmp.lt.u32.totalorder %s1199_s12, %s1701_s1 }
  0x1a   :  { %p1205_p10 = pnand %p1203_p9, %p1200_p8 }
  0x1c   :  { %1208 = shalt.err (!%p1205_p10)
}
  0x1d   :  { %s1209_s17 = scalar_lea.vmem %s33_s9, 256  ;;  %p1214_p12 = scmp.lt.s32.totalorder %s33_s9, %s33_s9 }
  0x1e   :  { %p1210_p11 = scmp.ne.s32.totalorder %s33_s9, %s1209_s17  ;;  %p1215_p13 = scmp.lt.s32.totalorder %s1209_s17, %s1209_s17 }
  0x20   :  { %p1216_p0 = por %p1215_p13, %p1214_p12 }
  0x22   :  { %p1217_p1 = pnand %p1216_p0, %p1210_p11 }
  0x24   :  { %1220 = shalt.err (!%p1217_p1)
}
  0x25   :  { %38 = dma.hbm_to_vmem [thread:$0]  %s1701_s1, 256, %s33_s9, [#allocation7], %s1250_s29, %s1250_s29, %s1251_s30  }
  0x26   :  { %1243 = dma.done.wait [#allocation4], 2048  }
  0x27   :  { %1244 = vsyncadd [#allocation4], 4294965248 }
  0x28   :  { %1245 = dma.done.wait [#allocation7], 256  }
  0x29   :  { %1246 = vsyncadd [#allocation7], 4294967040  ;;  %v76_v1 = vld [vmem:[#allocation6] sm:$0xff]  ;;  %v77_v2 = vld [vmem:[#allocation6 + $0x8] sm:$0xff]  ;;  %vm86_vm0 = vcmask 130048   ;;  %vm247_vm1 = vcmask 523264  }
  0x2a   :  { %v52_v3 = vld [vmem:[#allocation3] sm:$0xff]  ;;  %v78_v4 = vpack.c.bf16 %v77_v2, %v76_v1  ;;  %v53_v5 = vld [vmem:[#allocation3 + $0x8] sm:$0xff]  ;;  %v54_v10 = vld [vmem:[#allocation3 + $0x10] sm:$0xff]  ;;  %vm642_vm5 = vcmask 64512  }
  0x2b   :  { %v60_v6 = vld [vmem:[#allocation3 + $0x40] sm:$0xff]  ;;  %v61_v7 = vld [vmem:[#allocation3 + $0x48] sm:$0xff]  ;;  %v68_v8 = vpack.c.bf16 %v53_v5, %v52_v3  ;;  %v55_v11 = vld [vmem:[#allocation3 + $0x18] sm:$0xff] }
  0x2c   :  { %v72_v9 = vpack.c.bf16 %v61_v7, %v60_v6  ;;  %v62_v12 = vld [vmem:[#allocation3 + $0x50] sm:$0xff]  ;;  %1084 = vmatprep.subr.bf16.mxu0 %v78_v4  ;;  %1102 = vmatprep.subr.bf16.mxu1 %v78_v4  ;;  %v69_v13 = vpack.c.bf16 %v55_v11, %v54_v10  ;;  %v63_v14 = vld [vmem:[#allocation3 + $0x58] sm:$0xff]  ;;  %v56_v15 = vld [vmem:[#allocation3 + $0x20] sm:$0xff] }
  0x2d   :  { %v57_v16 = vld [vmem:[#allocation3 + $0x28] sm:$0xff]  ;;  %1085 = vmatpush3.bf16.msra.mxu0 %v78_v4  ;;  %1103 = vmatpush3.bf16.msra.mxu1 %v78_v4  ;;  %v73_v17 = vpack.c.bf16 %v63_v14, %v62_v12  ;;  %v64_v19 = vld [vmem:[#allocation3 + $0x60] sm:$0xff]  ;;  %v58_v22 = vld [vmem:[#allocation3 + $0x30] sm:$0xff] }
  0x2e   :  { %v70_v18 = vpack.c.bf16 %v57_v16, %v56_v15  ;;  %v65_v20 = vld [vmem:[#allocation3 + $0x68] sm:$0xff]  ;;  %1086 = vmatprep.mubr.msk.bf16.mxu0 %vm86_vm0, %v68_v8  ;;  %1094 = vmatprep.mubr.msk.bf16.mxu1 %vm86_vm0, %v72_v9  ;;  %v59_v23 = vld [vmem:[#allocation3 + $0x38] sm:$0xff]  ;;  %v66_v24 = vld [vmem:[#allocation3 + $0x70] sm:$0xff] }
  0x2f   :  { %v74_v21 = vpack.c.bf16 %v65_v20, %v64_v19  ;;  %v67_v25 = vld [vmem:[#allocation3 + $0x78] sm:$0xff]  ;;  %v71_v26 = vpack.c.bf16 %v59_v23, %v58_v22 }
  0x30   :  { %1087 = vmatmul.mubr.msk.bf16.vlgmr.msra.gmra.mrb[0].mxu0 %vm86_vm0, %v69_v13  ;;  %1095 = vmatmul.mubr.msk.bf16.vlgmr.msra.gmra.mrb[0].mxu1 %vm86_vm0, %v73_v17  ;;  %v75_v27 = vpack.c.bf16 %v67_v25, %v66_v24  ;;  %v1330_v28 = vld [vmem:[%s1702_s2] ss:$0 sm:$0xff]  ;;  %s1255_s2 = smov [#allocation8]  }
  0x31   :  { %1090 = vmatprep.mubr.msk.bf16.mxu0 %vm86_vm0, %v70_v18  ;;  %1098 = vmatprep.mubr.msk.bf16.mxu1 %vm86_vm0, %v74_v21  ;;  %v1339_v39 = vld [vmem:[%s1703_s3] ss:$0 sm:$0xff]  ;;  %s1051_s3 = sshll.u32 %s1255_s2, 4  ;;  %s1052_s3 = int_to_ptr.vmem [resolvable:$true] %s1051_s3 }
  0x32   :  { %s1221_s22 = scalar_lea.vmem %s1052_s3, 256  ;;  %p1226_p3 = scmp.lt.s32.totalorder %s1052_s3, %s1052_s3 }
  0x33   :  { %p1222_p2 = scmp.ne.s32.totalorder %s1052_s3, %s1221_s22  ;;  %p1227_p4 = scmp.lt.s32.totalorder %s1221_s22, %s1221_s22 }
  0x35   :  { %p1228_p5 = por %p1227_p4, %p1226_p3 }
  0x37   :  { %p1229_p6 = pnand %p1228_p5, %p1222_p2 }
  0x38   :  { %1091 = vmatmul.mubr.msk.bf16.gmra.mrb[4].mxu0 %vm86_vm0, %v71_v26  ;;  %1099 = vmatmul.mubr.msk.bf16.gmra.mrb[4].mxu1 %vm86_vm0, %v75_v27 }
 0x103   :  { %v1088_v29 = vpop.f32.mrb[0].mxu0  ;;  %v1096_v30 = vpop.f32.mrb[0].mxu1 }
 0x104   :  { %v154_v31 = vadd.f32 %v1088_v29, %v1330_v28  ;;  %v186_v32 = vadd.f32 %v1096_v30, %v1330_v28  ;;  %v145_v33 = vpop.f32.mrb[1].mxu0  ;;  %v177_v34 = vpop.f32.mrb[1].mxu1 }
 0x105   :  { %v146_v35 = vadd.f32 %v1330_v28, %v145_v33  ;;  %v1089_v36 = vpop.f32.mrb[2].mxu0  ;;  %v178_v37 = vadd.f32 %v1330_v28, %v177_v34  ;;  %v1097_v38 = vpop.f32.mrb[2].mxu1 }
 0x106   :  { %v210_v40 = vmax.f32 %v154_v31, 0.0  ;;  %v218_v41 = vmax.f32 %v186_v32, 0.0  ;;  %v157_v42 = vadd.f32 %v1089_v36, %v1330_v28  ;;  %v148_v43 = vpop.f32.mrb[3].mxu0  ;;  %v189_v44 = vadd.f32 %v1097_v38, %v1330_v28  ;;  %v180_v45 = vpop.f32.mrb[3].mxu1 }
 0x107   :  { %v208_v46 = vmax.f32 %v146_v35, 0.0  ;;  %v216_v47 = vmax.f32 %v178_v37, 0.0  ;;  %v149_v51 = vadd.f32 %v1330_v28, %v148_v43  ;;  %v181_v52 = vadd.f32 %v1330_v28, %v180_v45 }
 0x108   :  { %v241_v48 = vmul.f32 %v1339_v39, %v218_v41  ;;  %v233_v49 = vmul.f32 %v1339_v39, %v210_v40  ;;  %v211_v50 = vmax.f32 %v157_v42, 0.0  ;;  %v219_v54 = vmax.f32 %v189_v44, 0.0 }
 0x109   :  { %v239_v53 = vmul.f32 %v1339_v39, %v216_v47  ;;  %v231_v57 = vmul.f32 %v1339_v39, %v208_v46  ;;  %v209_v1 = vmax.f32 %v149_v51, 0.0  ;;  %v217_v4 = vmax.f32 %v181_v52, 0.0 }
 0x10a   :  { %v278_v55 = vsel %vm247_vm1, %v241_v48, 0.0  ;;  %v254_v56 = vsel %vm247_vm1, %v233_v49, 0.0  ;;  %v242_v6 = vmul.f32 %v1339_v39, %v219_v54  ;;  %v234_v7 = vmul.f32 %v1339_v39, %v211_v50  ;;  %v1074_v48 = vld [vmem:[#allocation2] ss:$0 sm:$0xff] }
 0x10b   :  { %279 = vadd.xlane.f32.xlu1 %v278_v55  ;;  %255 = vadd.xlane.f32.xlu0 %v254_v56  ;;  %v1100_v58 = vpop.f32.mrb[4].mxu1  ;;  %v1092_v59 = vpop.f32.mrb[4].mxu0  ;;  %v272_v60 = vsel %vm247_vm1, %v239_v53, 0.0  ;;  %v248_v5 = vsel %vm247_vm1, %v231_v57, 0.0  ;;  %v240_v16 = vmul.f32 %v1339_v39, %v217_v4  ;;  %v232_v17 = vmul.f32 %v1339_v39, %v209_v1 }
 0x10c   :  { %v202_v61 = vadd.f32 %v1100_v58, %v1330_v28  ;;  %v170_v62 = vadd.f32 %v1092_v59, %v1330_v28  ;;  %v193_v63 = vpop.f32.mrb[5].mxu1  ;;  %v161_v0 = vpop.f32.mrb[5].mxu0  ;;  %v281_v14 = vsel %vm247_vm1, %v242_v6, 0.0  ;;  %v257_v15 = vsel %vm247_vm1, %v234_v7, 0.0 }
 0x10d   :  { %v1093_v2 = vpop.f32.mrb[6].mxu0  ;;  %v1101_v3 = vpop.f32.mrb[6].mxu1  ;;  %v194_v12 = vadd.f32 %v1330_v28, %v193_v63  ;;  %v162_v13 = vadd.f32 %v1330_v28, %v161_v0  ;;  %v275_v24 = vsel %vm247_vm1, %v240_v16, 0.0  ;;  %v251_v25 = vsel %vm247_vm1, %v232_v17, 0.0 }
 0x10e   :  { %v196_v8 = vpop.f32.mrb[7].mxu1  ;;  %v164_v9 = vpop.f32.mrb[7].mxu0  ;;  %v222_v10 = vmax.f32 %v202_v61, 0.0  ;;  %v214_v11 = vmax.f32 %v170_v62, 0.0  ;;  %v205_v18 = vadd.f32 %v1101_v3, %v1330_v28  ;;  %v173_v26 = vadd.f32 %v1093_v2, %v1330_v28 }
 0x10f   :  { %273 = vadd.xlane.f32.xlu1 %v272_v60  ;;  %249 = vadd.xlane.f32.xlu0 %v248_v5  ;;  %v165_v19 = vadd.f32 %v1330_v28, %v164_v9  ;;  %v220_v20 = vmax.f32 %v194_v12, 0.0  ;;  %v212_v21 = vmax.f32 %v162_v13, 0.0  ;;  %v197_v34 = vadd.f32 %v1330_v28, %v196_v8 }
 0x110   :  { %v245_v22 = vmul.f32 %v1339_v39, %v222_v10  ;;  %v237_v23 = vmul.f32 %v1339_v39, %v214_v11  ;;  %v223_v27 = vmax.f32 %v205_v18, 0.0  ;;  %v1253_v35 = vmov 0  }
 0x111   :  { %v213_v29 = vmax.f32 %v165_v19, 0.0  ;;  %v243_v32 = vmul.f32 %v1339_v39, %v220_v20  ;;  %v235_v33 = vmul.f32 %v1339_v39, %v212_v21  ;;  %1111 = vset.pattern.permute.xlu1 %v1253_v35  ;;  %1112 = vset.pattern.permute.xlu0 %v1253_v35  ;;  %v215_v36 = vmax.f32 %v173_v26, 0.0 }
 0x112   :  { %v290_v30 = vsel %vm247_vm1, %v245_v22, 0.0  ;;  %v266_v31 = vsel %vm247_vm1, %v237_v23, 0.0  ;;  %v246_v40 = vmul.f32 %v1339_v39, %v223_v27  ;;  %v221_v42 = vmax.f32 %v197_v34, 0.0 }
 0x113   :  { %282 = vadd.xlane.f32.xlu1 %v281_v14  ;;  %258 = vadd.xlane.f32.xlu0 %v257_v15  ;;  %v284_v37 = vsel %vm247_vm1, %v243_v32, 0.0  ;;  %v260_v38 = vsel %vm247_vm1, %v235_v33, 0.0  ;;  %v236_v41 = vmul.f32 %v1339_v39, %v213_v29  ;;  %v238_v44 = vmul.f32 %v1339_v39, %v215_v36 }
 0x114   :  { %v293_v43 = vsel %vm247_vm1, %v246_v40, 0.0  ;;  %v244_v45 = vmul.f32 %v1339_v39, %v221_v42  ;;  %v319_v16 = vlaneseq }
 0x115   :  { %v263_v28 = vsel %vm247_vm1, %v236_v41, 0.0  ;;  %v269_v46 = vsel %vm247_vm1, %v238_v44, 0.0 }
 0x116   :  { %v287_v47 = vsel %vm247_vm1, %v244_v45, 0.0  ;;  %v1385_v17 = vshrl.u32 %v319_v16, 7  ;;  %v1390_v22 = vand.u32 127, %v319_v16 }
 0x117   :  { %276 = vadd.xlane.f32.xlu1 %v275_v24  ;;  %252 = vadd.xlane.f32.xlu0 %v251_v25 }
 0x118   :  { %v332_v18 = vadd.s32 80, %v1385_v17  ;;  %v324_v19 = vadd.s32 16, %v1385_v17  ;;  %v330_v21 = vadd.s32 64, %v1385_v17  ;;  %v342_v24 = vand.u32 7, %v1385_v17 }
 0x119   :  { %v333_v34 = vadd.s32 88, %v1385_v17  ;;  %v327_v26 = vadd.s32 40, %v1385_v17 }
 0x11a   :  { %v412_v20 = vand.u32 7, %v332_v18  ;;  %v356_v23 = vand.u32 7, %v324_v19  ;;  %v398_v27 = vand.u32 7, %v330_v21  ;;  %vm1404_vm4 = vcmp.eq.s32.totalorder %v342_v24, %v1390_v22 }
 0x11b   :  { %291 = vadd.xlane.f32.xlu1 %v290_v30  ;;  %267 = vadd.xlane.f32.xlu0 %v266_v31  ;;  %v325_v31 = vadd.s32 24, %v1385_v17 }
 0x11c   :  { %vm1394_vm2 = vcmp.eq.s32.totalorder %v412_v20, %v1390_v22  ;;  %vm1399_vm3 = vcmp.eq.s32.totalorder %v356_v23, %v1390_v22  ;;  %vm538_vm6 = vcmp.eq.s32.totalorder %v398_v27, %v1390_v22 }
 0x11d   :  { %v363_v40 = vand.u32 7, %v325_v31 }
 0x11f   :  { %285 = vadd.xlane.f32.xlu1 %v284_v37  ;;  %261 = vadd.xlane.f32.xlu0 %v260_v38  ;;  %v336_v38 = vadd.s32 112, %v1385_v17  ;;  %vm1426_vm7 = vcmp.eq.s32.totalorder %v363_v40, %v1390_v22 }
 0x123   :  { %294 = vadd.xlane.f32.xlu1 %v293_v43  ;;  %264 = vadd.xlane.f32.xlu0 %v263_v28  ;;  %v419_v43 = vand.u32 7, %v333_v34  ;;  %v323_v28 = vadd.s32 8, %v1385_v17 }
 0x125   :  { %vm1433_vm8 = vcmp.eq.s32.totalorder %v419_v43, %v1390_v22 }
 0x127   :  { %288 = vadd.xlane.f32.xlu1 %v287_v47  ;;  %270 = vadd.xlane.f32.xlu0 %v269_v46  ;;  %v334_v47 = vadd.s32 96, %v1385_v17 }
 0x198   :  { %v280_v49 = vpop.xlane.xlu1 %279  ;;  %v256_v50 = vpop.xlane.xlu0 %255 }
 0x199   :  { %v305_v51 = vadd.f32 %v1074_v48, %v256_v50  ;;  %v313_v52 = vadd.f32 %v1074_v48, %v280_v49  ;;  %v440_v49 = vand.u32 7, %v336_v38  ;;  %v331_v50 = vadd.s32 72, %v1385_v17 }
 0x19b   :  { %558 = vperm.xlu1 %1111, %v305_v51   ;;  %vm1440_vm9 = vcmp.eq.s32.totalorder %v440_v49, %v1390_v22 }
 0x19c   :  { %v274_v53 = vpop.xlane.xlu1 %273  ;;  %v250_v54 = vpop.xlane.xlu0 %249 }
 0x19d   :  { %v303_v55 = vadd.f32 %v1074_v48, %v250_v54  ;;  %v311_v57 = vadd.f32 %v1074_v48, %v274_v53  ;;  %v328_v53 = vadd.s32 48, %v1385_v17  ;;  %v335_v54 = vadd.s32 104, %v1385_v17 }
 0x19f   :  { %598 = vperm.xlu1 %1111, %v313_v52   ;;  %548 = vperm.xlu0 %1112, %v303_v55  }
 0x1a0   :  { %v283_v39 = vpop.xlane.xlu1 %282  ;;  %v259_v56 = vpop.xlane.xlu0 %258 }
 0x1a1   :  { %v306_v59 = vadd.f32 %v1074_v48, %v259_v56  ;;  %v314_v62 = vadd.f32 %v1074_v48, %v283_v39 }
 0x1a3   :  { %588 = vperm.xlu1 %1111, %v311_v57  }
 0x1a4   :  { %v277_v58 = vpop.xlane.xlu1 %276  ;;  %v253_v60 = vpop.xlane.xlu0 %252 }
 0x1a5   :  { %v304_v2 = vadd.f32 %v1074_v48, %v253_v60  ;;  %v312_v5 = vadd.f32 %v1074_v48, %v277_v58  ;;  %v349_v58 = vand.u32 7, %v323_v28  ;;  %v426_v60 = vand.u32 7, %v334_v47 }
 0x1a7   :  { %563 = vperm.xlu1 %1111, %v306_v59   ;;  %vm1447_vm10 = vcmp.eq.s32.totalorder %v349_v58, %v1390_v22  ;;  %vm1454_vm11 = vcmp.eq.s32.totalorder %v426_v60, %v1390_v22 }
 0x1a8   :  { %v292_v61 = vpop.xlane.xlu1 %291  ;;  %v268_v0 = vpop.xlane.xlu0 %267 }
 0x1a9   :  { %v317_v63 = vadd.f32 %v1074_v48, %v292_v61  ;;  %v309_v7 = vadd.f32 %v1074_v48, %v268_v0  ;;  %v326_v0 = vadd.s32 32, %v1385_v17 }
 0x1ab   :  { %618 = vperm.xlu0 %1112, %v317_v63   ;;  %603 = vperm.xlu1 %1111, %v314_v62   ;;  %v405_v63 = vand.u32 7, %v331_v50  ;;  %v370_v19 = vand.u32 7, %v326_v0  ;;  %v377_v50 = vand.u32 7, %v327_v26 }
 0x1ac   :  { %v286_v1 = vpop.xlane.xlu1 %285  ;;  %v262_v6 = vpop.xlane.xlu0 %261 }
 0x1ad   :  { %v315_v3 = vadd.f32 %v1074_v48, %v286_v1  ;;  %v307_v11 = vadd.f32 %v1074_v48, %v262_v6  ;;  %vm1463_vm12 = vcmp.eq.s32.totalorder %v405_v63, %v1390_v22  ;;  %vm1492_vm15 = vcmp.eq.s32.totalorder %v370_v19, %v1390_v22 }
 0x1ae   :  { %vm1502_vm1 = vcmp.eq.s32.totalorder %v377_v50, %v1390_v22 }
 0x1af   :  { %608 = vperm.xlu0 %1112, %v315_v3   ;;  %553 = vperm.xlu1 %1111, %v304_v2   ;;  %v384_v3 = vand.u32 7, %v328_v53 }
 0x1b0   :  { %v295_v4 = vpop.xlane.xlu1 %294  ;;  %v265_v10 = vpop.xlane.xlu0 %264 }
 0x1b1   :  { %v318_v12 = vadd.f32 %v1074_v48, %v295_v4  ;;  %v308_v13 = vadd.f32 %v1074_v48, %v265_v10  ;;  %v433_v4 = vand.u32 7, %v335_v54  ;;  %vm1469_vm13 = vcmp.eq.s32.totalorder %v384_v3, %v1390_v22 }
 0x1b3   :  { %593 = vperm.xlu1 %1111, %v312_v5   ;;  %vm1474_vm14 = vcmp.eq.s32.totalorder %v433_v4, %v1390_v22 }
 0x1b4   :  { %v289_v8 = vpop.xlane.xlu1 %288  ;;  %v271_v14 = vpop.xlane.xlu0 %270 }
 0x1b5   :  { %v316_v9 = vadd.f32 %v1074_v48, %v289_v8  ;;  %v310_v15 = vadd.f32 %v1074_v48, %v271_v14  ;;  %v337_v14 = vadd.s32 120, %v1385_v17 }
 0x1b7   :  { %613 = vperm.xlu0 %1112, %v316_v9   ;;  %578 = vperm.xlu1 %1111, %v309_v7  }
 0x1bb   :  { %623 = vperm.xlu0 %1112, %v318_v12   ;;  %568 = vperm.xlu1 %1111, %v307_v11  }
 0x1bf   :  { %573 = vperm.xlu1 %1111, %v308_v13  }
 0x1c3   :  { %583 = vperm.xlu1 %1111, %v310_v15  }
 0x21a   :  { %v559_v25 = vpop.permute.xlu1 %558 }
 0x21b   :  { %v628_v36 = vsel %vm1399_vm3, %v559_v25, 0.0 }
 0x21c   :  { %v657_v44 = vsel %vm642_vm5, %v628_v36, 0.0 }
 0x21d   :  { %v658_v55 = vrot.slane %v657_v44, 4 }
 0x21e   :  { %v599_v32 = vpop.permute.xlu1 %598  ;;  %v549_v33 = vpop.permute.xlu0 %548 }
 0x21f   :  { %v636_v35 = vsel %vm1394_vm2, %v599_v32, 0.0  ;;  %v626_v37 = vsel %vm1404_vm4, %v549_v33, 0.0  ;;  %v659_v5 = vadd.f32 %v658_v55, %v657_v44  ;;  %vm771_vm2 = vcmask 1041409  }
 0x220   :  { %v713_v41 = vsel %vm642_vm5, %v636_v35, 0.0  ;;  %v643_v45 = vsel %vm642_vm5, %v626_v37, 0.0  ;;  %v447_v37 = vand.u32 7, %v337_v14  ;;  %vm773_vm4 = vcmask 1042434  }
 0x221   :  { %v714_v51 = vrot.slane %v713_v41, 4  ;;  %v644_v39 = vrot.slane %v643_v45, 4  ;;  %v660_v27 = vrot.slane %v659_v5, 2 }
 0x222   :  { %v589_v42 = vpop.permute.xlu1 %588  ;;  %vm1497_vm0 = vcmp.eq.s32.totalorder %v447_v37, %v1390_v22 }
 0x223   :  { %v634_v46 = vsel %vm538_vm6, %v589_v42, 0.0  ;;  %v715_v1 = vadd.f32 %v714_v51, %v713_v41  ;;  %v645_v6 = vadd.f32 %v644_v39, %v643_v45  ;;  %v329_v42 = vadd.s32 56, %v1385_v17 }
 0x224   :  { %v699_v48 = vsel %vm642_vm5, %v634_v46, 0.0  ;;  %v1486_v46 = vadd.f32 %v660_v27, %v659_v5  ;;  %vm775_vm6 = vcmask 1043459  }
 0x225   :  { %v700_v56 = vrot.slane %v699_v48, 4  ;;  %v716_v20 = vrot.slane %v715_v1, 2  ;;  %v646_v29 = vrot.slane %v645_v6, 2 }
 0x226   :  { %v564_v57 = vpop.permute.xlu1 %563  ;;  %v662_v3 = vrot.slane %v1486_v46, 1 }
 0x227   :  { %v629_v61 = vsel %vm1426_vm7, %v564_v57, 0.0  ;;  %v701_v7 = vadd.f32 %v700_v56, %v699_v48  ;;  %v717_v43 = vadd.f32 %v716_v20, %v715_v1  ;;  %v647_v47 = vadd.f32 %v646_v29, %v645_v6 }
 0x228   :  { %v664_v2 = vsel %vm642_vm5, %v629_v61, 0.0  ;;  %v391_v56 = vand.u32 7, %v329_v42  ;;  %vm777_vm7 = vcmask 1044484  }
 0x229   :  { %v665_v11 = vrot.slane %v664_v2, 4  ;;  %v702_v30 = vrot.slane %v701_v7, 2  ;;  %v718_v57 = vrot.slane %v717_v43, 1  ;;  %v648_v61 = vrot.slane %v647_v47, 1 }
 0x22a   :  { %v604_v8 = vpop.permute.xlu1 %603  ;;  %v619_v9 = vpop.permute.xlu0 %618  ;;  %vm1514_vm3 = vcmp.eq.s32.totalorder %v391_v56, %v1390_v22 }
 0x22b   :  { %v637_v12 = vsel %vm1433_vm8, %v604_v8, 0.0  ;;  %v640_v16 = vsel %vm1440_vm9, %v619_v9, 0.0  ;;  %v666_v34 = vadd.f32 %v665_v11, %v664_v2  ;;  %v703_v48 = vadd.f32 %v702_v30, %v701_v7 }
 0x22c   :  { %v720_v15 = vsel %vm642_vm5, %v637_v12, 0.0  ;;  %v741_v23 = vsel %vm642_vm5, %v640_v16, 0.0  ;;  %v1518_v12 = vadd.f32 %v718_v57, %v717_v43  ;;  %v1523_v16 = vadd.f32 %v648_v61, %v647_v47 }
 0x22d   :  { %v721_v21 = vrot.slane %v720_v15, 4  ;;  %v742_v31 = vrot.slane %v741_v23, 4  ;;  %v667_v51 = vrot.slane %v666_v34, 2  ;;  %v704_v4 = vrot.slane %v703_v48, 1 }
 0x22e   :  { %v554_v32 = vpop.permute.xlu1 %553  ;;  %v609_v33 = vpop.permute.xlu0 %608  ;;  %vm779_vm8 = vcmask 1045509   ;;  %vm781_vm9 = vcmask 1046534  }
 0x22f   :  { %v627_v35 = vsel %vm1447_vm10, %v554_v32, 0.0  ;;  %v638_v36 = vsel %vm1454_vm11, %v609_v33, 0.0  ;;  %v722_v38 = vadd.f32 %v721_v21, %v720_v15  ;;  %v743_v28 = vadd.f32 %v742_v31, %v741_v23 }
 0x230   :  { %v650_v40 = vsel %vm642_vm5, %v627_v35, 0.0  ;;  %v727_v41 = vsel %vm642_vm5, %v638_v36, 0.0  ;;  %v1507_v5 = vadd.f32 %v667_v51, %v666_v34  ;;  %v1526_v22 = vadd.f32 %v704_v4, %v703_v48 }
 0x231   :  { %v651_v44 = vrot.slane %v650_v40, 4  ;;  %v728_v45 = vrot.slane %v727_v41, 4  ;;  %v723_v55 = vrot.slane %v722_v38, 2  ;;  %v744_v58 = vrot.slane %v743_v28, 2 }
 0x232   :  { %v594_v49 = vpop.permute.xlu1 %593  ;;  %v669_v24 = vrot.slane %v1507_v5, 1  ;;  %vm783_vm10 = vcmask 1047559  }
 0x233   :  { %v652_v52 = vadd.f32 %v651_v44, %v650_v40  ;;  %v729_v53 = vadd.f32 %v728_v45, %v727_v41  ;;  %v635_v54 = vsel %vm1463_vm12, %v594_v49, 0.0  ;;  %v724_v7 = vadd.f32 %v723_v55, %v722_v38 }
 0x234   :  { %v706_v39 = vsel %vm642_vm5, %v635_v54, 0.0  ;;  %v1520_v13 = vadd.f32 %v744_v58, %v743_v28 }
 0x235   :  { %v653_v59 = vrot.slane %v652_v52, 2  ;;  %v707_v60 = vrot.slane %v706_v39, 4  ;;  %v730_v62 = vrot.slane %v729_v53, 2  ;;  %v725_v27 = vrot.slane %v724_v7, 1 }
 0x236   :  { %v579_v63 = vpop.permute.xlu1 %578  ;;  %v614_v0 = vpop.permute.xlu0 %613  ;;  %v746_v32 = vrot.slane %v1520_v13, 1 }
 0x237   :  { %v708_v6 = vadd.f32 %v707_v60, %v706_v39  ;;  %v654_v8 = vadd.f32 %v653_v59, %v652_v52  ;;  %v632_v9 = vsel %vm1469_vm13, %v579_v63, 0.0  ;;  %v639_v10 = vsel %vm1474_vm14, %v614_v0, 0.0 }
 0x238   :  { %v685_v15 = vsel %vm642_vm5, %v632_v9, 0.0  ;;  %v731_v18 = vadd.f32 %v730_v62, %v729_v53  ;;  %v734_v20 = vsel %vm642_vm5, %v639_v10, 0.0  ;;  %v1540_v45 = vadd.f32 %v725_v27, %v724_v7 }
 0x239   :  { %v709_v14 = vrot.slane %v708_v6, 2  ;;  %v686_v19 = vrot.slane %v685_v15, 4  ;;  %v735_v26 = vrot.slane %v734_v20, 4  ;;  %v655_v29 = vrot.slane %v654_v8, 1 }
 0x23a   :  { %v569_v21 = vpop.permute.xlu1 %568  ;;  %v624_v23 = vpop.permute.xlu0 %623  ;;  %v732_v36 = vrot.slane %v731_v18, 1  ;;  %v1561_v7 = vadd.f32 %v662_v3, %v1486_v46  ;;  %v670_v46 = vadd.f32 %v669_v24, %v1507_v5 }
 0x23b   :  { %v710_v25 = vadd.f32 %v709_v14, %v708_v6  ;;  %v630_v30 = vsel %vm1492_vm15, %v569_v21, 0.0  ;;  %v641_v31 = vsel %vm1497_vm0, %v624_v23, 0.0  ;;  %v736_v34 = vadd.f32 %v735_v26, %v734_v20 }
 0x23c   :  { %v671_v35 = vsel %vm642_vm5, %v630_v30, 0.0  ;;  %v687_v37 = vadd.f32 %v686_v19, %v685_v15  ;;  %v748_v40 = vsel %vm642_vm5, %v641_v31, 0.0  ;;  %v1542_v47 = vadd.f32 %v655_v29, %v654_v8 }
 0x23d   :  { %v711_v33 = vrot.slane %v710_v25, 1  ;;  %v672_v38 = vrot.slane %v671_v35, 4  ;;  %v737_v43 = vrot.slane %v736_v34, 2  ;;  %v749_v28 = vrot.slane %v748_v40, 4 }
 0x23e   :  { %v574_v41 = vpop.permute.xlu1 %573  ;;  %v733_v54 = vadd.f32 %v732_v36, %v731_v18  ;;  %v688_v55 = vrot.slane %v687_v37, 2  ;;  %v772_v61 = vsel %vm771_vm2, %v1542_v47, %v1523_v16  ;;  %v747_v19 = vadd.f32 %v746_v32, %v1520_v13 }
 0x23f   :  { %v1536_v42 = vadd.f32 %v711_v33, %v710_v25  ;;  %v631_v44 = vsel %vm1502_vm1, %v574_v41, 0.0  ;;  %v673_v48 = vadd.f32 %v672_v38, %v671_v35  ;;  %v738_v51 = vadd.f32 %v737_v43, %v736_v34 }
 0x240   :  { %v678_v49 = vsel %vm642_vm5, %v631_v44, 0.0  ;;  %v750_v52 = vadd.f32 %v749_v28, %v748_v40  ;;  %v689_v8 = vadd.f32 %v688_v55, %v687_v37  ;;  %v774_v21 = vsel %vm773_vm4, %v1561_v7, %v772_v61 }
 0x241   :  { %v785_v50 = vsel %vm771_vm2, %v1536_v42, %v1526_v22  ;;  %v679_v53 = vrot.slane %v678_v49, 4  ;;  %v674_v39 = vrot.slane %v673_v48, 2  ;;  %v739_v57 = vrot.slane %v738_v51, 1 }
 0x242   :  { %v584_v17 = vpop.permute.xlu1 %583  ;;  %v786_v56 = vsel %vm773_vm4, %v1518_v12, %v785_v50  ;;  %v751_v58 = vrot.slane %v750_v52, 2  ;;  %v690_v26 = vrot.slane %v689_v8, 1  ;;  %v776_v13 = vsel %vm775_vm6, %v670_v46, %v774_v21 }
 0x243   :  { %v680_v59 = vadd.f32 %v679_v53, %v678_v49  ;;  %v633_v60 = vsel %vm1514_vm3, %v584_v17, 0.0  ;;  %v675_v62 = vadd.f32 %v674_v39, %v673_v48  ;;  %v787_v0 = vsel %vm775_vm6, %v1540_v45, %v786_v56 }
 0x244   :  { %v692_v63 = vsel %vm642_vm5, %v633_v60, 0.0  ;;  %v740_v1 = vadd.f32 %v739_v57, %v738_v51  ;;  %v752_v2 = vadd.f32 %v751_v58, %v750_v52  ;;  %v788_v10 = vsel %vm777_vm7, %v733_v54, %v787_v0 }
 0x245   :  { %v681_v4 = vrot.slane %v680_v59, 2  ;;  %v693_v6 = vrot.slane %v692_v63, 4  ;;  %v676_v9 = vrot.slane %v675_v62, 1  ;;  %v691_v24 = vadd.f32 %v690_v26, %v689_v8 }
 0x246   :  { %v753_v11 = vrot.slane %v752_v2, 1  ;;  %v789_v18 = vsel %vm779_vm8, %v740_v1, %v788_v10 }
 0x247   :  { %v682_v14 = vadd.f32 %v681_v4, %v680_v59  ;;  %v694_v15 = vadd.f32 %v693_v6, %v692_v63  ;;  %v1566_v20 = vadd.f32 %v676_v9, %v675_v62  ;;  %v790_v27 = vsel %vm781_vm9, %v747_v19, %v789_v18 }
 0x248   :  { %v754_v25 = vadd.f32 %v753_v11, %v752_v2 }
 0x249   :  { %v683_v3 = vrot.slane %v682_v14, 1  ;;  %v695_v23 = vrot.slane %v694_v15, 2  ;;  %v778_v33 = vsel %vm777_vm7, %v1566_v20, %v776_v13 }
 0x24a   :  { %v791_v31 = vsel %vm783_vm10, %v754_v25, %v790_v27 }
 0x24b   :  { %v684_v29 = vadd.f32 %v683_v3, %v682_v14  ;;  %v696_v30 = vadd.f32 %v695_v23, %v694_v15  ;;  %v797_v32 = vsel %vm642_vm5, %v791_v31, -inf }
 0x24c   :  { %798 = vmax.xlane.f32.xlu0 %v797_v32 }
 0x24d   :  { %v697_v34 = vrot.slane %v696_v30, 1  ;;  %v780_v5 = vsel %vm779_vm8, %v684_v29, %v778_v33 }
 0x24e   :  { %v782_v36 = vsel %vm781_vm9, %v691_v24, %v780_v5 }
 0x24f   :  { %v698_v35 = vadd.f32 %v697_v34, %v696_v30 }
 0x251   :  { %v784_v37 = vsel %vm783_vm10, %v698_v35, %v782_v36 }
 0x252   :  { %v794_v38 = vsel %vm642_vm5, %v784_v37, -inf }
 0x253   :  { %795 = vmax.xlane.f32.xlu1 %v794_v38 }
 0x2d9   :  { %v799_v40 = vpop.xlane.xlu0 %798 }
 0x2da   :  { %v809_v41 = vrot.slane %v799_v40, 1  ;;  %v810_v43 = vrot.slane %v799_v40, 2  ;;  %v811_v28 = vrot.slane %v799_v40, 3  ;;  %v812_v44 = vrot.slane %v799_v40, 4 }
 0x2db   :  { %v813_v48 = vrot.slane %v799_v40, 5  ;;  %v814_v49 = vrot.slane %v799_v40, 6  ;;  %v815_v50 = vrot.slane %v799_v40, 7  ;;  %v840_v51 = vsub.f32 %v1526_v22, %v799_v40 }
 0x2dc   :  { %v841_v52 = vsub.f32 %v1536_v42, %v809_v41  ;;  %v842_v53 = vsub.f32 %v1518_v12, %v810_v43  ;;  %v843_v55 = vsub.f32 %v1540_v45, %v811_v28  ;;  %v844_v39 = vsub.f32 %v733_v54, %v812_v44 }
 0x2dd   :  { %v845_v17 = vsub.f32 %v740_v1, %v813_v48  ;;  %v864_v56 = vmul.f32 1.442695, %v840_v51  ;;  %v846_v57 = vsub.f32 %v747_v19, %v814_v49  ;;  %v847_v61 = vsub.f32 %v754_v25, %v815_v50 }
 0x2de   :  { %v866_v58 = vmul.f32 1.442695, %v841_v52  ;;  %v868_v59 = vmul.f32 1.442695, %v842_v53  ;;  %v870_v60 = vmul.f32 1.442695, %v843_v55 }
 0x2df   :  { %1113 = vpow2.f32 %v864_v56  ;;  %v872_v62 = vmul.f32 1.442695, %v844_v39  ;;  %v874_v0 = vmul.f32 1.442695, %v845_v17  ;;  %v876_v2 = vmul.f32 1.442695, %v846_v57 }
 0x2e0   :  { %v796_v63 = vpop.xlane.xlu1 %795  ;;  %1115 = vpow2.f32 %v866_v58 }
 0x2e1   :  { %v802_v22 = vrot.slane %v796_v63, 1  ;;  %v803_v42 = vrot.slane %v796_v63, 2  ;;  %v804_v4 = vrot.slane %v796_v63, 3  ;;  %1117 = vpow2.f32 %v868_v59 }
 0x2e2   :  { %v805_v12 = vrot.slane %v796_v63, 4  ;;  %v806_v45 = vrot.slane %v796_v63, 5  ;;  %v807_v54 = vrot.slane %v796_v63, 6  ;;  %1119 = vpow2.f32 %v870_v60 }
 0x2e3   :  { %v808_v1 = vrot.slane %v796_v63, 7  ;;  %v832_v6 = vsub.f32 %v1523_v16, %v796_v63  ;;  %v833_v8 = vsub.f32 %v1542_v47, %v802_v22  ;;  %1121 = vpow2.f32 %v872_v62 }
 0x2e4   :  { %v834_v9 = vsub.f32 %v1561_v7, %v803_v42  ;;  %v835_v10 = vsub.f32 %v670_v46, %v804_v4  ;;  %v836_v11 = vsub.f32 %v1566_v20, %v805_v12  ;;  %v837_v14 = vsub.f32 %v684_v29, %v806_v45 }
 0x2e5   :  { %v848_v15 = vmul.f32 1.442695, %v832_v6  ;;  %v850_v18 = vmul.f32 1.442695, %v833_v8  ;;  %1123 = vpow2.f32 %v874_v0  ;;  %v838_v23 = vsub.f32 %v691_v24, %v807_v54 }
 0x2e6   :  { %v852_v19 = vmul.f32 1.442695, %v834_v9  ;;  %v854_v21 = vmul.f32 1.442695, %v835_v10  ;;  %1125 = vpow2.f32 %v876_v2  ;;  %v856_v3 = vmul.f32 1.442695, %v836_v11 }
 0x2e7   :  { %1127 = vpow2.f32 %v848_v15  ;;  %v839_v25 = vsub.f32 %v698_v35, %v808_v1  ;;  %v878_v16 = vmul.f32 1.442695, %v847_v61  ;;  %v858_v47 = vmul.f32 1.442695, %v837_v14 }
 0x2e8   :  { %1129 = vpow2.f32 %v850_v18  ;;  %v860_v7 = vmul.f32 1.442695, %v838_v23  ;;  %v1254_v1 = vmov 0.0  }
 0x2e9   :  { %1131 = vpow2.f32 %v852_v19  ;;  %v1589_v26 = vpop.eup %1113  ;;  %v862_v46 = vmul.f32 1.442695, %v839_v25  ;;  %996 = vst [vmem:[#allocation8] sm:$0xff] %v1254_v1  ;;  %997 = vst [vmem:[#allocation8 + $0x8] sm:$0xff] %v1254_v1 }
 0x2ea   :  { %1133 = vpow2.f32 %v854_v21  ;;  %v1591_v20 = vpop.eup %1115 }
 0x2eb   :  { %1135 = vpow2.f32 %v856_v3  ;;  %v1593_v27 = vpop.eup %1117  ;;  %v910_v29 = vrot.slane %v1591_v20, 7 }
 0x2ec   :  { %1137 = vpow2.f32 %v878_v16  ;;  %v1596_v30 = vpop.eup %1119  ;;  %v912_v31 = vrot.slane %v1593_v27, 6 }
 0x2ed   :  { %1139 = vpow2.f32 %v858_v47  ;;  %v1599_v13 = vpop.eup %1121  ;;  %v911_v32 = vsel %vm771_vm2, %v910_v29, %v1589_v26  ;;  %v914_v33 = vrot.slane %v1596_v30, 5 }
 0x2ee   :  { %1141 = vpow2.f32 %v860_v7  ;;  %v913_v5 = vsel %vm773_vm4, %v912_v31, %v911_v32  ;;  %v916_v24 = vrot.slane %v1599_v13, 4 }
 0x2ef   :  { %v1604_v34 = vpop.eup %1123  ;;  %1143 = vpow2.f32 %v862_v46  ;;  %v915_v36 = vsel %vm775_vm6, %v914_v33, %v913_v5 }
 0x2f0   :  { %v1608_v35 = vpop.eup %1125  ;;  %v917_v38 = vsel %vm777_vm7, %v916_v24, %v915_v36  ;;  %v918_v40 = vrot.slane %v1604_v34, 3 }
 0x2f1   :  { %v1611_v37 = vpop.eup %1127  ;;  %v920_v49 = vrot.slane %v1608_v35, 2 }
 0x2f2   :  { %v1615_v41 = vpop.eup %1129  ;;  %v919_v28 = vsel %vm779_vm8, %v918_v40, %v917_v38 }
 0x2f3   :  { %v1617_v43 = vpop.eup %1131  ;;  %v896_v44 = vrot.slane %v1615_v41, 7  ;;  %v921_v39 = vsel %vm781_vm9, %v920_v49, %v919_v28 }
 0x2f4   :  { %v1621_v48 = vpop.eup %1133  ;;  %v898_v50 = vrot.slane %v1617_v43, 6 }
 0x2f5   :  { %v1625_v51 = vpop.eup %1135  ;;  %v897_v52 = vsel %vm771_vm2, %v896_v44, %v1611_v37  ;;  %v900_v53 = vrot.slane %v1621_v48, 5 }
 0x2f6   :  { %v1630_v55 = vpop.eup %1137  ;;  %v899_v17 = vsel %vm773_vm4, %v898_v50, %v897_v52  ;;  %v902_v56 = vrot.slane %v1625_v51, 4 }
 0x2f7   :  { %v1635_v57 = vpop.eup %1139  ;;  %v922_v58 = vrot.slane %v1630_v55, 1  ;;  %v901_v59 = vsel %vm775_vm6, %v900_v53, %v899_v17 }
 0x2f8   :  { %v1639_v60 = vpop.eup %1141  ;;  %v903_v61 = vsel %vm777_vm7, %v902_v56, %v901_v59  ;;  %v904_v62 = vrot.slane %v1635_v57, 3 }
 0x2f9   :  { %v1643_v63 = vpop.eup %1143  ;;  %v923_v0 = vsel %vm783_vm10, %v922_v58, %v921_v39  ;;  %v906_v2 = vrot.slane %v1639_v60, 2 }
 0x2fa   :  { %v929_v22 = vsel %vm642_vm5, %v923_v0, 0.0  ;;  %v905_v42 = vsel %vm779_vm8, %v904_v62, %v903_v61  ;;  %v908_v4 = vrot.slane %v1643_v63, 1 }
 0x2fb   :  { %930 = vadd.xlane.f32.xlu1 %v929_v22  ;;  %v907_v12 = vsel %vm781_vm9, %v906_v2, %v905_v42 }
 0x2fc   :  { %v909_v45 = vsel %vm783_vm10, %v908_v4, %v907_v12 }
 0x2fd   :  { %v926_v54 = vsel %vm642_vm5, %v909_v45, 0.0 }
 0x2fe   :  { %927 = vadd.xlane.f32.xlu0 %v926_v54 }
 0x388   :  { %v931_v6 = vpop.xlane.xlu1 %930 }
 0x389   :  { %v941_v8 = vrot.slane %v931_v6, 1  ;;  %v942_v9 = vrot.slane %v931_v6, 2  ;;  %v943_v10 = vrot.slane %v931_v6, 3  ;;  %v944_v11 = vrot.slane %v931_v6, 4 }
 0x38a   :  { %1145 = vrcp.f32 %v931_v6  ;;  %v945_v14 = vrot.slane %v931_v6, 5  ;;  %v946_v15 = vrot.slane %v931_v6, 6  ;;  %v947_v19 = vrot.slane %v931_v6, 7 }
 0x38b   :  { %1147 = vrcp.f32 %v941_v8  ;;  %v928_v18 = vpop.xlane.xlu0 %927 }
 0x38c   :  { %1149 = vrcp.f32 %v942_v9  ;;  %v934_v21 = vrot.slane %v928_v18, 1  ;;  %v935_v3 = vrot.slane %v928_v18, 2  ;;  %v936_v23 = vrot.slane %v928_v18, 3 }
 0x38d   :  { %1151 = vrcp.f32 %v943_v10  ;;  %v937_v25 = vrot.slane %v928_v18, 4  ;;  %v938_v16 = vrot.slane %v928_v18, 5  ;;  %v939_v7 = vrot.slane %v928_v18, 6 }
 0x38e   :  { %1153 = vrcp.f32 %v944_v11  ;;  %v940_v29 = vrot.slane %v928_v18, 7 }
 0x38f   :  { %1155 = vrcp.f32 %v945_v14 }
 0x390   :  { %1157 = vrcp.f32 %v946_v15 }
 0x391   :  { %1159 = vrcp.f32 %v947_v19 }
 0x392   :  { %1161 = vrcp.f32 %v928_v18 }
 0x393   :  { %1163 = vrcp.f32 %v934_v21 }
 0x394   :  { %v1146_v47 = vpop.eup %1145  ;;  %1165 = vrcp.f32 %v935_v3 }
 0x395   :  { %v1148_v46 = vpop.eup %1147  ;;  %1167 = vrcp.f32 %v936_v23  ;;  %v981_v36 = vmul.f32 %v1146_v47, %v1589_v26 }
 0x396   :  { %v1150_v31 = vpop.eup %1149  ;;  %1169 = vrcp.f32 %v937_v25  ;;  %v983_v32 = vmul.f32 %v1148_v46, %v1591_v20 }
 0x397   :  { %v1152_v33 = vpop.eup %1151  ;;  %1171 = vrcp.f32 %v938_v16  ;;  %v985_v5 = vmul.f32 %v1150_v31, %v1593_v27 }
 0x398   :  { %v1154_v24 = vpop.eup %1153  ;;  %1173 = vrcp.f32 %v939_v7  ;;  %v987_v38 = vmul.f32 %v1152_v33, %v1596_v30  ;;  %v1028_v40 = vrot.slane %v983_v32, 7 }
 0x399   :  { %v1156_v28 = vpop.eup %1155  ;;  %1175 = vrcp.f32 %v940_v29  ;;  %v989_v44 = vmul.f32 %v1154_v24, %v1599_v13  ;;  %v1030_v49 = vrot.slane %v985_v5, 6 }
 0x39a   :  { %v1158_v50 = vpop.eup %1157  ;;  %v991_v52 = vmul.f32 %v1156_v28, %v1604_v34  ;;  %v1029_v20 = vsel %vm771_vm2, %v1028_v40, %v981_v36  ;;  %v1032_v53 = vrot.slane %v987_v38, 5 }
 0x39b   :  { %v1160_v39 = vpop.eup %1159  ;;  %v993_v27 = vmul.f32 %v1158_v50, %v1608_v35  ;;  %v1031_v17 = vsel %vm773_vm4, %v1030_v49, %v1029_v20  ;;  %v1034_v26 = vrot.slane %v989_v44, 4 }
 0x39c   :  { %v1162_v56 = vpop.eup %1161  ;;  %v995_v30 = vmul.f32 %v1160_v39, %v1630_v55  ;;  %v1033_v58 = vsel %vm775_vm6, %v1032_v53, %v1031_v17  ;;  %v1036_v59 = vrot.slane %v991_v52, 3 }
 0x39d   :  { %v1164_v13 = vpop.eup %1163  ;;  %v1035_v61 = vsel %vm777_vm7, %v1034_v26, %v1033_v58  ;;  %v1038_v62 = vrot.slane %v993_v27, 2  ;;  %v965_v55 = vmul.f32 %v1162_v56, %v1611_v37 }
 0x39e   :  { %v1166_v34 = vpop.eup %1165  ;;  %v967_v0 = vmul.f32 %v1164_v13, %v1615_v41  ;;  %v1037_v2 = vsel %vm779_vm8, %v1036_v59, %v1035_v61  ;;  %v1040_v22 = vrot.slane %v995_v30, 1 }
 0x39f   :  { %v1168_v35 = vpop.eup %1167  ;;  %v969_v42 = vmul.f32 %v1166_v34, %v1617_v43  ;;  %v1039_v4 = vsel %vm781_vm9, %v1038_v62, %v1037_v2 }
 0x3a0   :  { %v1170_v12 = vpop.eup %1169  ;;  %v971_v45 = vmul.f32 %v1168_v35, %v1621_v48  ;;  %v1014_v54 = vrot.slane %v967_v0, 7  ;;  %v1041_v1 = vsel %vm783_vm10, %v1040_v22, %v1039_v4 }
 0x3a1   :  { %v1172_v6 = vpop.eup %1171  ;;  %v973_v8 = vmul.f32 %v1170_v12, %v1625_v51  ;;  %v1016_v41 = vrot.slane %v969_v42, 6  ;;  %1045 = vst.msk [vmem:[#allocation8 + $0x8] sm:$0xff] %vm642_vm5, %v1041_v1 }
 0x3a2   :  { %v1174_v9 = vpop.eup %1173  ;;  %v975_v10 = vmul.f32 %v1172_v6, %v1635_v57  ;;  %v1015_v43 = vsel %vm771_vm2, %v1014_v54, %v965_v55  ;;  %v1018_v11 = vrot.slane %v971_v45, 5 }
 0x3a3   :  { %v1176_v14 = vpop.eup %1175  ;;  %v977_v37 = vmul.f32 %v1174_v9, %v1639_v60  ;;  %v1017_v48 = vsel %vm773_vm4, %v1016_v41, %v1015_v43  ;;  %v1020_v15 = vrot.slane %v973_v8, 4 }
 0x3a4   :  { %v979_v18 = vmul.f32 %v1176_v14, %v1643_v63  ;;  %v1019_v19 = vsel %vm775_vm6, %v1018_v11, %v1017_v48  ;;  %v1022_v51 = vrot.slane %v975_v10, 3 }
 0x3a5   :  { %v1021_v21 = vsel %vm777_vm7, %v1020_v15, %v1019_v19  ;;  %v1024_v3 = vrot.slane %v977_v37, 2 }
 0x3a6   :  { %v1023_v57 = vsel %vm779_vm8, %v1022_v51, %v1021_v21  ;;  %v1026_v23 = vrot.slane %v979_v18, 1 }
 0x3a7   :  { %v1025_v25 = vsel %vm781_vm9, %v1024_v3, %v1023_v57 }
 0x3a8   :  { %v1027_v60 = vsel %vm783_vm10, %v1026_v23, %v1025_v25 }
 0x3a9   :  { %1044 = vst.msk [vmem:[#allocation8] sm:$0xff] %vm642_vm5, %v1027_v60 }
 0x3aa   :  { %1232 = shalt.err (!%p1229_p6)
}
 0x3ab   :  { %s1233_s25 = scalar_lea.hbm %s1705_s5, 256 }
 0x3ac   :  { %p1234_p7 = scmp.ne.s32.totalorder %s1705_s5, %s1233_s25  ;;  %p1237_p8 = scmp.lt.u32.totalorder %s1233_s25, %s1705_s5 }
 0x3ae   :  { %p1239_p9 = pnand %p1237_p8, %p1234_p7 }
 0x3b0   :  { %1242 = shalt.err (!%p1239_p9)
}
 0x3b1   :  { %1057 = dma.vmem_to_hbm [thread:$0]  %s1052_s3, 256, %s1705_s5, [#allocation5], %s1250_s29, %s1250_s29, %s1251_s30  }
 0x3b2   :  { %1247 = dma.done.wait [#allocation5], 256  }
 0x3b3   :  { %1248 = vsyncadd [#allocation5], 4294967040 }
 0x3b4   :  { %1061 = vsyncpa [#allocation4], 1 }
 0x3b5   :  { %1062 = vsyncpa [#allocation7], 1 }
 0x3b6   :  { %1063 = vsyncpa [#allocation5], 1 }

</bundles_post_ra>
